<compile_context>
chip_gen: v7x
topology: tpu7x:2x2x1
jax: 0.10.0
libtpu: 0.0.40
codegen_flags: <defaults>
</compile_context>

<pallas_src>
import functools
import math

import jax
import jax.numpy as jnp
from jax.experimental import pallas as pl
from jax.experimental.pallas import tpu as pltpu

NEG_SLOPE = 0.2   # GATLayer default alpha (LeakyReLU negative slope)
LANES = 128


def _round_up(x, m):
    return (x + m - 1) // m * m


def _vmem_limit_bytes(blocks, extra_bytes=0):
    """Scoped-VMEM budget: double-buffered I/O tiles + headroom for temporaries."""
    total = extra_bytes
    for shape, itemsize in blocks:
        total += 2 * math.prod(shape) * itemsize
    total = int(1.5 * total) + (4 << 20)
    return max(32 << 20, min(total, 64 << 20))


# --------------------------------------------------------------------------- #
# Kernel 1: fused projections (grid over row blocks of x, each block once).   #
# --------------------------------------------------------------------------- #
def proj_kernel(x_ref, wall_ref, wres_ref, alr_ref, b_ref,
                h_ref, rb_ref, elr_ref):
    x = x_ref[...]                                                # (tm, Fin) f32
    # Wide per-head projection: bf16 MXU operands, f32 accumulation, bf16 store.
    h = jnp.dot(x.astype(jnp.bfloat16), wall_ref[...],
                preferred_element_type=jnp.float32)               # (tm, HDp)
    h_ref[...] = h.astype(jnp.bfloat16)
    # Residual projection + bias (kept f32: tiny and executed once).
    rb_ref[...] = (jnp.dot(x, wres_ref[...],
                           preferred_element_type=jnp.float32) + b_ref[...])
    # Folded attention scores: elr[:, :H] = el, elr[:, H:] = er.
    elr_ref[...] = jnp.dot(x, alr_ref[...],
                           preferred_element_type=jnp.float32)    # (tm, 2H)


# --------------------------------------------------------------------------- #
# Kernel 2: masked edge softmax + neighborhood aggregation + residual/bias.   #
# --------------------------------------------------------------------------- #
def attn_kernel(adj_ref, er_ref, elt_ref, h_ref, rb_ref, o_ref,
                *, num_heads, d_out, hd):
    maskf = adj_ref[...].astype(jnp.float32)         # (tm, N): 1.0 on edge j->i
    mask = maskf > 0.0
    neg = jnp.float32(-1e30)

    er = er_ref[...]                                 # (tm, H)   f32
    elt = elt_ref[...]                               # (H, N)    f32
    h_all = h_ref[...]                               # (N, HDp)  bf16
    rb = rb_ref[...]                                 # (tm, HDp) f32 (res + bias)

    for h in range(num_heads):
        # e[i, j] = er[i, h] + el[h, j]  -- plain VPU broadcast add.
        e = er[:, h:h + 1] + elt[h:h + 1, :]                      # (tm, N)
        e = jnp.where(e > 0, e, NEG_SLOPE * e)                    # LeakyReLU
        e = jnp.where(mask, e, neg)                               # mask non-edges
        m = jnp.max(e, axis=-1, keepdims=True)                    # (tm, 1)
        p = jnp.exp(e - m) * maskf                                # zero-in-degree -> 0
        denom = jnp.maximum(jnp.sum(p, axis=-1, keepdims=True), 1e-9)
        # Aggregate first (bf16 MXU, f32 accum), normalize after the matmul:
        # (tm, D) multiplies instead of (tm, N).
        agg = jnp.dot(p.astype(jnp.bfloat16),
                      h_all[:, h * d_out:(h + 1) * d_out],
                      preferred_element_type=jnp.float32)         # (tm, D)
        scale = pl.reciprocal(denom, approx=True)                 # EUP slot
        sl = slice(h * d_out, (h + 1) * d_out)
        o_ref[:, sl] = (agg * scale + rb[:, sl]).astype(o_ref.dtype)

    if hd < o_ref.shape[-1]:                         # zero the lane padding once
        o_ref[:, hd:] = jnp.zeros((o_ref.shape[0], o_ref.shape[-1] - hd),
                                  o_ref.dtype)


# --------------------------------------------------------------------------- #
# Wrapper                                                                     #
# --------------------------------------------------------------------------- #
def gat_layer_forward(x, adj, w, wres, attn_l, attn_r, bias, *,
                      agg_mode="flatten", tm=128):
    N, Fin = x.shape
    H, _, D = w.shape
    HD = H * D
    HDp = _round_up(HD, LANES)                 # lane-dense output slab

    tm = min(tm, N)
    # int8 adjacency tiling => tm must be a multiple of 32.
    assert N % tm == 0 and tm % 32 == 0, (N, tm)

    # ---- fold / pad parameters (tiny XLA-side layout plumbing) -------------
    w_all = jnp.transpose(w, (1, 0, 2)).reshape(Fin, HD)        # [f, h*D + d]
    wres_all = jnp.transpose(wres, (1, 0, 2)).reshape(Fin, HD)
    bias_all = bias.reshape(1, HD)
    if HDp != HD:
        pad = HDp - HD
        w_all = jnp.pad(w_all, ((0, 0), (0, pad)))
        wres_all = jnp.pad(wres_all, ((0, 0), (0, pad)))
        bias_all = jnp.pad(bias_all, ((0, 0), (0, pad)))
    a_l = jnp.einsum("hfd,hd->fh", w, attn_l[:, 0, :])          # (Fin, H)
    a_r = jnp.einsum("hfd,hd->fh", w, attn_r[:, 0, :])          # (Fin, H)
    alr = jnp.concatenate([a_l, a_r], axis=1)                   # (Fin, 2H)

    w_all_bf = w_all.astype(jnp.bfloat16)
    adj_i8 = (adj != 0).astype(jnp.int8)       # 4x smaller HBM stream / VMEM tile

    # ---- kernel 1: projections (computed once, not per destination block) --
    proj_blocks = [((tm, Fin), 4), ((Fin, HDp), 2), ((Fin, HDp), 4),
                   ((Fin, 2 * H), 4), ((1, HDp), 4),
                   ((tm, HDp), 2), ((tm, HDp), 4), ((tm, 2 * H), 4)]
    h_all, rb, elr = pl.pallas_call(
        proj_kernel,
        out_shape=(jax.ShapeDtypeStruct((N, HDp), jnp.bfloat16),
                   jax.ShapeDtypeStruct((N, HDp), jnp.float32),
                   jax.ShapeDtypeStruct((N, 2 * H), jnp.float32)),
        grid_spec=pltpu.PrefetchScalarGridSpec(
            num_scalar_prefetch=0,
            grid=(N // tm,),
            in_specs=[
                pl.BlockSpec((tm, Fin), lambda i: (i, 0)),       # x row block
                pl.BlockSpec((Fin, HDp), lambda i: (0, 0)),      # W_all (bf16)
                pl.BlockSpec((Fin, HDp), lambda i: (0, 0)),      # Wres_all
                pl.BlockSpec((Fin, 2 * H), lambda i: (0, 0)),    # [A_l | A_r]
                pl.BlockSpec((1, HDp), lambda i: (0, 0)),        # bias
            ],
            out_specs=[
                pl.BlockSpec((tm, HDp), lambda i: (i, 0)),       # h_all (bf16)
                pl.BlockSpec((tm, HDp), lambda i: (i, 0)),       # residual + bias
                pl.BlockSpec((tm, 2 * H), lambda i: (i, 0)),     # [el | er]
            ]),
        compiler_params=pltpu.CompilerParams(
            dimension_semantics=("parallel",),
            vmem_limit_bytes=_vmem_limit_bytes(proj_blocks)),
    )(x, w_all_bf, wres_all, alr, bias_all)

    el_t = jnp.transpose(elr[:, :H])           # (H, N): sources in lanes
    er = elr[:, H:]                            # (N, H)

    # ---- kernel 2: masked softmax attention + aggregation ------------------
    attn_blocks = [((tm, N), 1), ((tm, H), 4), ((H, N), 4),
                   ((N, HDp), 2), ((tm, HDp), 4), ((tm, HDp), 4)]
    kernel = functools.partial(attn_kernel, num_heads=H, d_out=D, hd=HD)
    out = pl.pallas_call(
        kernel,
        out_shape=jax.ShapeDtypeStruct((N, HDp), jnp.float32),
        grid_spec=pltpu.PrefetchScalarGridSpec(
            num_scalar_prefetch=0,
            grid=(N // tm,),
            in_specs=[
                pl.BlockSpec((tm, N), lambda i: (i, 0)),         # adj (int8)
                pl.BlockSpec((tm, H), lambda i: (i, 0)),         # er rows
                pl.BlockSpec((H, N), lambda i: (0, 0)),          # el (shared)
                pl.BlockSpec((N, HDp), lambda i: (0, 0)),        # h_all (shared)
                pl.BlockSpec((tm, HDp), lambda i: (i, 0)),       # residual + bias
            ],
            out_specs=pl.BlockSpec((tm, HDp), lambda i: (i, 0))),
        compiler_params=pltpu.CompilerParams(
            dimension_semantics=("parallel",),
            vmem_limit_bytes=_vmem_limit_bytes(
                attn_blocks, extra_bytes=6 * tm * N * 4)),
    )(adj_i8, er, el_t, h_all, rb)

    out = out[:, :HD]                          # strip the lane padding
    if agg_mode == "flatten":
        return out
    return out.reshape(N, H, D).mean(axis=1)


def gat_reference(x, adj, w, wres, attn_l, attn_r, bias, *, agg_mode="flatten"):
    """Pure-JAX f32 reference for the same dense-GAT forward."""
    H = w.shape[0]
    outs = []
    for hi in range(H):
        hfeat = x @ w[hi]
        el = (hfeat * attn_l[hi]).sum(-1, keepdims=True)
        er = (hfeat * attn_r[hi]).sum(-1, keepdims=True)
        s = er + el.T
        s = jnp.where(s > 0, s, NEG_SLOPE * s)
        s_m = jnp.where(adj > 0, s, -1e30)
        m = s_m.max(-1, keepdims=True)
        p = jnp.where(adj > 0, jnp.exp(s_m - m), 0.0)
        a = p / jnp.maximum(p.sum(-1, keepdims=True), 1e-9)
        outs.append(a @ hfeat + x @ wres[hi] + bias[hi])
    out = jnp.stack(outs, axis=1)                                  # (N, H, D)
    if agg_mode == "flatten":
        return out.reshape(out.shape[0], -1)
    return out.mean(axis=1)


if __name__ == "__main__":
    # Small demo: N/tm = 2 row blocks (even -> balanced v7x megacore split).
    N, F_IN, HEADS, D_OUT = 256, 32, 4, 16   # in_feats != heads*out -> linear residual

    key = jax.random.PRNGKey(0)
    k1, k2, k3, k4, k5, k6, k7 = jax.random.split(key, 7)

    features = jax.random.normal(k1, (N, F_IN), dtype=jnp.float32)

    # Deterministic random graph + self-loops (adj[i, j] = edge j -> i).
    adj = (jax.random.uniform(k2, (N, N)) < 0.15).astype(jnp.float32)
    adj = jnp.maximum(adj, jnp.eye(N, dtype=jnp.float32))

    w = (jax.random.normal(k3, (HEADS, F_IN, D_OUT)) * 0.1).astype(jnp.float32)
    wres = (jax.random.normal(k4, (HEADS, F_IN, D_OUT)) * 0.1).astype(jnp.float32)
    attn_l = (jax.random.normal(k5, (HEADS, 1, D_OUT)) * 0.1).astype(jnp.float32)
    attn_r = (jax.random.normal(k6, (HEADS, 1, D_OUT)) * 0.1).astype(jnp.float32)
    bias = (jax.random.normal(k7, (HEADS, 1, D_OUT)) * 0.01).astype(jnp.float32)

    out = gat_layer_forward(features, adj, w, wres, attn_l, attn_r, bias,
                            agg_mode="flatten")
    out = jax.block_until_ready(out)
    assert out.shape == (N, HEADS * D_OUT), out.shape

    ref = jax.block_until_ready(
        gat_reference(features, adj, w, wres, attn_l, attn_r, bias,
                      agg_mode="flatten"))
    # bf16 value matrix + bf16 attention probabilities + approx reciprocal:
    # keep a tolerance consistent with the reduced-precision MXU path.
    err = float(jnp.max(jnp.abs(out - ref)))
    assert jnp.allclose(out, ref, rtol=3e-2, atol=3e-2), err

    print("KERNEL_OK")
</pallas_src>

<mosaic_0001>
module attributes {stable_mosaic.version = 11 : i64} {
  func.func @proj_kernel(%arg0: i32, %arg1: memref<128x32xf32, #tpu.memory_space<vmem>>, %arg2: memref<32x128xbf16, #tpu.memory_space<vmem>>, %arg3: memref<32x128xf32, #tpu.memory_space<vmem>>, %arg4: memref<32x8xf32, #tpu.memory_space<vmem>>, %arg5: memref<1x128xf32, #tpu.memory_space<vmem>>, %arg6: memref<128x128xbf16, #tpu.memory_space<vmem>>, %arg7: memref<128x128xf32, #tpu.memory_space<vmem>>, %arg8: memref<128x8xf32, #tpu.memory_space<vmem>>) attributes {dimension_semantics = [#tpu.dimension_semantics<parallel>], iteration_bounds = array<i64: 2>, scalar_prefetch = 0 : i64, scratch_operands = 0 : i64, tpu.core_type = #tpu.core_type<tc>, window_params = [{transform_indices = @transform_0, window_bounds = array<i64: 128, 32>}, {pipeline_mode = #tpu.pipeline_mode<synchronous>, transform_indices = @transform_1, window_bounds = array<i64: 32, 128>}, {pipeline_mode = #tpu.pipeline_mode<synchronous>, transform_indices = @transform_2, window_bounds = array<i64: 32, 128>}, {pipeline_mode = #tpu.pipeline_mode<synchronous>, transform_indices = @transform_3, window_bounds = array<i64: 32, 8>}, {pipeline_mode = #tpu.pipeline_mode<synchronous>, transform_indices = @transform_4, window_bounds = array<i64: 1, 128>}, {transform_indices = @transform_5, window_bounds = array<i64: 128, 128>}, {transform_indices = @transform_6, window_bounds = array<i64: 128, 128>}, {transform_indices = @transform_7, window_bounds = array<i64: 128, 8>}]} {
    %c0 = arith.constant 0 : index
    %c0_0 = arith.constant 0 : index
    %0 = vector.load %arg1[%c0, %c0_0] : memref<128x32xf32, #tpu.memory_space<vmem>>, vector<128x32xf32>
    %1 = arith.truncf %0 : vector<128x32xf32> to vector<128x32xbf16>
    %c0_1 = arith.constant 0 : index
    %c0_2 = arith.constant 0 : index
    %2 = vector.load %arg2[%c0_1, %c0_2] : memref<32x128xbf16, #tpu.memory_space<vmem>>, vector<32x128xbf16>
    %cst = arith.constant dense<0.000000e+00> : vector<128x128xf32>
    %3 = tpu.matmul %1, %2, %cst {dimension_numbers = #tpu.dot_dimension_numbers<[1], [0], [0], [1], [0, 0, 1, 1], [], []>} : vector<128x32xbf16>, vector<32x128xbf16>, vector<128x128xf32> -> vector<128x128xf32>
    %4 = arith.truncf %3 : vector<128x128xf32> to vector<128x128xbf16>
    %c0_3 = arith.constant 0 : index
    %c0_4 = arith.constant 0 : index
    %5 = vector.load %arg6[%c0_3, %c0_4] : memref<128x128xbf16, #tpu.memory_space<vmem>>, vector<128x128xbf16>
    tpu.vector_store %arg6[%c0_3, %c0_4], %4 {strides = array<i32>} : memref<128x128xbf16, #tpu.memory_space<vmem>>, vector<128x128xbf16>,
    %c0_5 = arith.constant 0 : index
    %c0_6 = arith.constant 0 : index
    %6 = vector.load %arg3[%c0_5, %c0_6] : memref<32x128xf32, #tpu.memory_space<vmem>>, vector<32x128xf32>
    %cst_7 = arith.constant dense<0.000000e+00> : vector<128x128xf32>
    %7 = tpu.matmul %0, %6, %cst_7 {dimension_numbers = #tpu.dot_dimension_numbers<[1], [0], [0], [1], [0, 0, 1, 1], [], []>} : vector<128x32xf32>, vector<32x128xf32>, vector<128x128xf32> -> vector<128x128xf32>
    %c0_8 = arith.constant 0 : index
    %c0_9 = arith.constant 0 : index
    %8 = vector.load %arg5[%c0_8, %c0_9] : memref<1x128xf32, #tpu.memory_space<vmem>>, vector<1x128xf32>
    %9 = vector.broadcast %8 : vector<1x128xf32> to vector<128x128xf32>
    %10 = arith.addf %7, %9 : vector<128x128xf32>
    %c0_10 = arith.constant 0 : index
    %c0_11 = arith.constant 0 : index
    %11 = vector.load %arg7[%c0_10, %c0_11] : memref<128x128xf32, #tpu.memory_space<vmem>>, vector<128x128xf32>
    tpu.vector_store %arg7[%c0_10, %c0_11], %10 {strides = array<i32>} : memref<128x128xf32, #tpu.memory_space<vmem>>, vector<128x128xf32>,
    %c0_12 = arith.constant 0 : index
    %c0_13 = arith.constant 0 : index
    %12 = vector.load %arg4[%c0_12, %c0_13] : memref<32x8xf32, #tpu.memory_space<vmem>>, vector<32x8xf32>
    %cst_14 = arith.constant dense<0.000000e+00> : vector<128x8xf32>
    %13 = tpu.matmul %0, %12, %cst_14 {dimension_numbers = #tpu.dot_dimension_numbers<[1], [0], [0], [1], [0, 0, 1, 1], [], []>} : vector<128x32xf32>, vector<32x8xf32>, vector<128x8xf32> -> vector<128x8xf32>
    %c0_15 = arith.constant 0 : index
    %c0_16 = arith.constant 0 : index
    %14 = vector.load %arg8[%c0_15, %c0_16] : memref<128x8xf32, #tpu.memory_space<vmem>>, vector<128x8xf32>
    tpu.vector_store %arg8[%c0_15, %c0_16], %13 {strides = array<i32>} : memref<128x8xf32, #tpu.memory_space<vmem>>, vector<128x8xf32>,
    return
  }
  func.func @transform_0(%arg0: i32) -> (i32, i32) {
    %c0_i32 = arith.constant 0 : i32
    %c0_i32_0 = arith.constant 0 : i32
    return %arg0, %c0_i32 : i32, i32
  }
  func.func @transform_1(%arg0: i32) -> (i32, i32) {
    %c0_i32 = arith.constant 0 : i32
    %c0_i32_0 = arith.constant 0 : i32
    %c0_i32_1 = arith.constant 0 : i32
    return %c0_i32, %c0_i32_0 : i32, i32
  }
  func.func @transform_2(%arg0: i32) -> (i32, i32) {
    %c0_i32 = arith.constant 0 : i32
    %c0_i32_0 = arith.constant 0 : i32
    %c0_i32_1 = arith.constant 0 : i32
    return %c0_i32, %c0_i32_0 : i32, i32
  }
  func.func @transform_3(%arg0: i32) -> (i32, i32) {
    %c0_i32 = arith.constant 0 : i32
    %c0_i32_0 = arith.constant 0 : i32
    %c0_i32_1 = arith.constant 0 : i32
    return %c0_i32, %c0_i32_0 : i32, i32
  }
  func.func @transform_4(%arg0: i32) -> (i32, i32) {
    %c0_i32 = arith.constant 0 : i32
    %c0_i32_0 = arith.constant 0 : i32
    %c0_i32_1 = arith.constant 0 : i32
    return %c0_i32, %c0_i32_0 : i32, i32
  }
  func.func @transform_5(%arg0: i32) -> (i32, i32) {
    %c0_i32 = arith.constant 0 : i32
    %c0_i32_0 = arith.constant 0 : i32
    return %arg0, %c0_i32 : i32, i32
  }
  func.func @transform_6(%arg0: i32) -> (i32, i32) {
    %c0_i32 = arith.constant 0 : i32
    %c0_i32_0 = arith.constant 0 : i32
    return %arg0, %c0_i32 : i32, i32
  }
  func.func @transform_7(%arg0: i32) -> (i32, i32) {
    %c0_i32 = arith.constant 0 : i32
    %c0_i32_0 = arith.constant 0 : i32
    return %arg0, %c0_i32 : i32, i32
  }
}

</mosaic_0001>

<bundles_post_ra>
// kernel: tpu_custom_call.1
= control target key start
LH: loop header
LB: loop body
LE: loop exit
PB: predicated region body
PF: predicated region fallthrough
CT: control target
= control target key end

     0   :  { %s1897_s0 = inlined_call_operand.vmem [shape: f32[256,32], index: 0, kind: input, shape index: {}]   ;;  %s1898_s1 = inlined_call_operand.vmem [shape: bf16[32,128], index: 1, kind: input, shape index: {}]   ;;  %s1899_s2 = inlined_call_operand.vmem [shape: f32[32,128], index: 2, kind: input, shape index: {}]   ;;  %s1900_s3 = inlined_call_operand.vmem [shape: f32[32,8], index: 3, kind: input, shape index: {}]   ;;  %s1901_s4 = inlined_call_operand.vmem [shape: f32[1,128], index: 4, kind: input, shape index: {}]   ;;  %s1902_s5 = inlined_call_operand.hbm [shape: bf16[256,128], index: 5, kind: output, shape index: {0}]   ;;  %s1903_s6 = inlined_call_operand.hbm [shape: f32[256,128], index: 6, kind: output, shape index: {1}]   ;;  %s1904_s7 = inlined_call_operand.vmem [shape: f32[256,8], index: 7, kind: output, shape index: {2}]  }
   0x1   :  { %1905 = sst [smem:[#allocation8_spill]] %s1897_s0 }
   0x2   :  { %13 = vsyncpa [#allocation3], 0 }
   0x3   :  { %15 = vsyncpa [#allocation3 + $0x1], 0 }
   0x4   :  { %16 = vsyncpa [#allocation5], 0 }
   0x5   :  { %18 = vsyncpa [#allocation5 + $0x1], 0  ;;  %s1585_s24 = smov 0   ;;  %s1587_s25 = smov 0  }
   0x6   :  { %s1589_s26 = smov 0   ;;  %s1591_s27 = smov 0  }
   0x7 LB: > { %s1606_s28 = sadd.s32 4294967295, %s1537_s27   ;;  %s1097_s29 = sadd.s32 4294967294, %s1537_s27   ;;  %s1537_s27 = sphi %s1591_s27, %s1913_s27   ;;  %s1533_s26 = sphi %s1589_s26, %s1912_s26   ;;  %s1529_s25 = sphi %s1587_s25, %s1911_s25   ;;  %s1525_s24 = sphi %s1585_s24, %s1910_s24  }
   0x8   : > { %s1610_s30 = sadd.s32 1, %s1537_s27   ;;  %s141_s8 = sadd.s32 1, %s1533_s26 }
   0x9   : > { %s138_s9 = ssub.s32 %s1537_s27, %s1610_s30  ;;  %p151_p0 = scmp.ne.s32.totalorder %s1533_s26, %s1529_s25 }
   0xa   : > { %p139_p1 = scmp.eq.s32.totalorder %s138_s9, 0  ;;  %p152_p2 = scmp.eq.s32.totalorder %s1606_s28, 1 }
   0xb   : > { %p157_p3 = scmp.ne.s32.totalorder %s1529_s25, %s1525_s24  ;;  %p158_p4 = scmp.eq.s32.totalorder %s1097_s29, 1 }
   0xc   : > { %s1621_s10 = scalar_select %p139_p1, %s1533_s26, %s141_s8  }
   0xd   : > { %p1623_p5 = por %p152_p2, %p151_p0  ;;  %p1627_p6 = por %p158_p4, %p157_p3 }
   0xe   : > { %p1100_p7 = scmp.ge.s32.totalorder %s1537_s27, 1  ;;  %p249_p8 = scmp.lt.s32.totalorder %s1537_s27, 3 }
  0x10   : > { %p250_p9 = pnand %p1100_p7, %p249_p8 }
  0x11   : > { %v1441_v0 = vld [vmem:[%s1898_s1] sm:$0xff] (!%p250_p9)   ;;  %s1103_s15 = sshll.u32 (!%p250_p9), %s1606_s28, 4  ;;  %v1442_v1 = vld [vmem:[%s1898_s1 + $0x8] sm:$0xff] (!%p250_p9)   ;;  %v550_v8 = vld [vmem:[%s1899_s2 + $0x10] sm:$0xff] (!%p250_p9)  ;;  %s1908_s0 = sld [smem:[#allocation8_spill]] (!%p250_p9)  ;;  %vm346_vm0 = vcmask (!%p250_p9), 261120  }
  0x12   : > { %253 = sbr.rel (%p250_p9) target bundleno = 306 (0x132), region = 40  ;;  %p292_p10 = scmp.lt.s32.totalorder (!%p250_p9), %s1103_s15, 31  ;;  %1389 = vmatprep.subr.bf16.mxu1 (!%p250_p9), %v1441_v0  ;;  %1289 = vmatprep.subr.bf16.mxu0 (!%p250_p9), %v1441_v0  ;;  %v548_v2 = vld [vmem:[%s1899_s2] sm:$0xff] (!%p250_p9)  ;;  %v549_v3 = vld [vmem:[%s1899_s2 + $0x8] sm:$0xff] (!%p250_p9)  ;;  %v551_v9 = vld [vmem:[%s1899_s2 + $0x18] sm:$0xff] (!%p250_p9)  ;;  %vm917_vm1 = vcmask (!%p250_p9), 64512  }
  0x13   : > { %v768_v4 = vld [vmem:[%s1900_s3] sm:$0xff] (!%p250_p9)  ;;  %1391 = vmatpush3.bf16.msra.mxu1 (!%p250_p9), %v1441_v0  ;;  %1290 = vmatpush3.bf16.msra.mxu0 (!%p250_p9), %v1441_v0  ;;  %v769_v5 = vld [vmem:[%s1900_s3 + $0x8] sm:$0xff] (!%p250_p9)  ;;  %v1373_v6 = vpack.c.bf16 (!%p250_p9), %v549_v3, %v548_v2  ;;  %v770_v10 = vld [vmem:[%s1900_s3 + $0x10] sm:$0xff] (!%p250_p9)  ;;  %v1377_v28 = vpack.c.bf16 (!%p250_p9), %v551_v9, %v550_v8  ;;  %s1731_s8 = sand.u32 (!%p250_p9), 1, %s1529_s25   ;;  %s1190_s16 = sshll.u32 (!%p250_p9), %s1606_s28, 10 }
  0x14   : > { %1390 = vmatprep.subr.bf16.mxu1 (!%p250_p9), %v1442_v1  ;;  %1291 = vmatprep.subr.bf16.mxu0 (!%p250_p9), %v1442_v1  ;;  %v1381_v7 = vpack.c.bf16 (!%p250_p9), %v769_v5, %v768_v4  ;;  %v771_v11 = vld [vmem:[%s1900_s3 + $0x18] sm:$0xff] (!%p250_p9)  ;;  %s1101_s13 = sshll.u32 (!%p250_p9), %s1731_s8, 6  ;;  %s1739_s21 = scalar_lea.hbm (!%p250_p9), %s1902_s5, %s1190_s16  ;;  %v1746_v62 = vld [vmem:[%s1901_s4] ss:$0 sm:$0xff] (!%p250_p9) }
  0x15   : > { %v1385_v31 = vpack.c.bf16 (!%p250_p9), %v771_v11, %v770_v10  ;;  %s276_s14 = scalar_lea.vmem (!%p250_p9), [#allocation2], %s1101_s13  ;;  %s935_s19 = scalar_lea.sflag (!%p250_p9), [#allocation3], %s1731_s8 }
  0x16   : > { %s958_s17 = sshll.u32 (!%p250_p9), %s276_s14, 4  ;;  %s1741_s17 = int_to_ptr.vmem [resolvable:$true] %s958_s17 }
  0x17   : > { %1392 = vmatpush3.bf16.msra.mxu1 (!%p250_p9), %v1442_v1  ;;  %1292 = vmatpush3.bf16.msra.mxu0 (!%p250_p9), %v1442_v1  ;;  %s1443_s20 = scalar_lea.vmem (!%p250_p9), %s1741_s17, 1024 }
  0x18   : > { %1374 = vmatprep.subr.bf16.mxu1 (!%p250_p9), %v1373_v6  ;;  %1382 = vmatprep.subr.bf16.mxu0 (!%p250_p9), %v1381_v7  ;;  %p1444_p11 = scmp.ne.s32.totalorder (!%p250_p9), %s1741_s17, %s1443_s20 }
  0x19   : > { %s1915_s15 = smov (!%p292_p10, %s1103_s15), 31 }
  0x1a   : > { %s1104_s9 = sshll.u32 %s1915_s15, 3  ;;  %p1445_p12 = pnand %p1444_p11, %p1623_p5 }
  0x1b   : > { %s1663_s18 = scalar_lea.vmem %s1908_s0, %s1104_s9  ;;  %s1753_s16 = scalar_lea.vmem %s1904_s7, %s1104_s9 }
  0x1c   : > { %v314_v12 = vld [vmem:[%s1663_s18 + $0x40] sm:$0xff]  ;;  %v315_v13 = vld [vmem:[%s1663_s18 + $0x48] sm:$0xff]  ;;  %v316_v17 = vld [vmem:[%s1663_s18 + $0x50] sm:$0xff]  ;;  %p1446_p13 = pneg %p1445_p12 }
  0x1d   : > { %v306_v14 = vld [vmem:[%s1663_s18] sm:$0xff]  ;;  %v326_v15 = vpack.c.bf16 %v315_v13, %v314_v12  ;;  %v307_v16 = vld [vmem:[%s1663_s18 + $0x8] sm:$0xff]  ;;  %v317_v18 = vld [vmem:[%s1663_s18 + $0x58] sm:$0xff] }
  0x1e   : > { %v322_v19 = vpack.c.bf16 %v307_v16, %v306_v14  ;;  %v327_v20 = vpack.c.bf16 %v317_v18, %v316_v17  ;;  %v308_v21 = vld [vmem:[%s1663_s18 + $0x10] sm:$0xff]  ;;  %v309_v22 = vld [vmem:[%s1663_s18 + $0x18] sm:$0xff]  ;;  %v318_v23 = vld [vmem:[%s1663_s18 + $0x60] sm:$0xff] }
  0x1f   : > { %1301 = vmatprep.mubr.msk.bf16.mxu1 %vm346_vm0, %v326_v15  ;;  %v323_v24 = vpack.c.bf16 %v309_v22, %v308_v21  ;;  %v319_v25 = vld [vmem:[%s1663_s18 + $0x68] sm:$0xff]  ;;  %v310_v26 = vld [vmem:[%s1663_s18 + $0x20] sm:$0xff]  ;;  %v320_v32 = vld [vmem:[%s1663_s18 + $0x70] sm:$0xff] }
  0x20   : > { %v311_v27 = vld [vmem:[%s1663_s18 + $0x28] sm:$0xff]  ;;  %1293 = vmatprep.mubr.msk.bf16.mxu0 %vm346_vm0, %v322_v19  ;;  %1302 = vmatmul.mubr.msk.bf16.vlgmr.msra.gmra.mrb[0].mxu1 %vm346_vm0, %v327_v20  ;;  %v328_v29 = vpack.c.bf16 %v319_v25, %v318_v23  ;;  %v321_v33 = vld [vmem:[%s1663_s18 + $0x78] sm:$0xff]  ;;  %v312_v34 = vld [vmem:[%s1663_s18 + $0x30] sm:$0xff] }
  0x21   : > { %v324_v30 = vpack.c.bf16 %v311_v27, %v310_v26  ;;  %1294 = vmatmul.mubr.msk.bf16.vlgmr.msra.gmra.mrb[0].mxu0 %vm346_vm0, %v323_v24  ;;  %1376 = vmatpush3.bf16.msra.mxu1 %v1373_v6  ;;  %v313_v35 = vld [vmem:[%s1663_s18 + $0x38] sm:$0xff]  ;;  %v329_v36 = vpack.c.bf16 %v321_v33, %v320_v32  ;;  %s1539_s18 = smov [#allocation2]  }
  0x22   : > { %1384 = vmatpush3.bf16.msra.mxu0 %v1381_v7  ;;  %1305 = vmatprep.mubr.msk.bf16.mxu1 %vm346_vm0, %v328_v29  ;;  %v325_v37 = vpack.c.bf16 %v313_v35, %v312_v34  ;;  %s1447_s0 = sshll.u32 %s1539_s18, 4  ;;  %s1448_s0 = int_to_ptr.vmem [resolvable:$false] %s1447_s0 }
  0x23   : > { %1297 = vmatprep.mubr.msk.bf16.mxu0 %vm346_vm0, %v324_v30  ;;  %1378 = vmatprep.subr.bf16.mxu1 %v1377_v28  ;;  %s1449_s22 = scalar_lea.vmem %s1448_s0, 2048  ;;  %p1450_p0 = scmp.lt.s32.totalorder %s1741_s17, %s1448_s0 }
  0x24   : > { %1386 = vmatprep.subr.bf16.mxu0 %v1385_v31  ;;  %p1451_p1 = scmp.lt.s32.totalorder %s1449_s22, %s1443_s20 }
  0x25   : > { %1380 = vmatpush3.bf16.msra.mxu1 %v1377_v28 }
  0x26   : > { %1388 = vmatpush3.bf16.msra.mxu0 %v1385_v31  ;;  %p1452_p2 = por %p1451_p1, %p1450_p0 }
  0x28   : > { %1306 = vmatmul.mubr.msk.bf16.gmra.mrb[4].mxu1 %vm346_vm0, %v329_v36  ;;  %p1453_p3 = pnand %p1452_p2, %p1446_p13 }
  0x29   : > { %1298 = vmatmul.mubr.msk.bf16.gmra.mrb[4].mxu0 %vm346_vm0, %v325_v37  ;;  %1317 = vmatprep.mubr.msk.f32.mxu1 %vm346_vm0, %v306_v14 }
  0x2a   : > { %1349 = vmatprep.mubr.msk.f32.mxu0 %vm346_vm0, %v306_v14 }
  0x30   : > { %1318 = vmatmul.mubr.msk.f32.vlgmr.msra.gmra.mrb[8].mxu1 %vm346_vm0, %v307_v16 }
  0x31   : > { %1320 = vmatprep.mubr.msk.f32.mxu1 %vm346_vm0, %v308_v21  ;;  %1350 = vmatmul.mubr.msk.f32.vlgmr.msra.gmra.mrb[8].mxu0 %vm346_vm0, %v307_v16 }
  0x32   : > { %1352 = vmatprep.mubr.msk.f32.mxu0 %vm346_vm0, %v308_v21 }
  0x34   : > { %1321 = vmatmul.mubr.msk.f32.gmra.mrb[10].mxu1 %vm346_vm0, %v309_v22 }
  0x35   : > { %1323 = vmatprep.mubr.msk.f32.mxu1 %vm346_vm0, %v310_v26  ;;  %1353 = vmatmul.mubr.msk.f32.gmra.mrb[10].mxu0 %vm346_vm0, %v309_v22 }
  0x36   : > { %1355 = vmatprep.mubr.msk.f32.mxu0 %vm346_vm0, %v310_v26 }
  0x38   : > { %1324 = vmatmul.mubr.msk.f32.gmra.mrb[12].mxu1 %vm346_vm0, %v311_v27 }
  0x39   : > { %1326 = vmatprep.mubr.msk.f32.mxu1 %vm346_vm0, %v312_v34  ;;  %1356 = vmatmul.mubr.msk.f32.gmra.mrb[12].mxu0 %vm346_vm0, %v311_v27 }
  0x3a   : > { %1358 = vmatprep.mubr.msk.f32.mxu0 %vm346_vm0, %v312_v34 }
  0x3c   : > { %1327 = vmatmul.mubr.msk.f32.gmra.mrb[14].mxu1 %vm346_vm0, %v313_v35 }
  0x3d   : > { %1329 = vmatprep.mubr.msk.f32.mxu1 %vm346_vm0, %v314_v12  ;;  %1359 = vmatmul.mubr.msk.f32.gmra.mrb[14].mxu0 %vm346_vm0, %v313_v35 }
  0x3e   : > { %1361 = vmatprep.mubr.msk.f32.mxu0 %vm346_vm0, %v314_v12 }
  0x40   : > { %1330 = vmatmul.mubr.msk.f32.gmra.mrb[16].mxu1 %vm346_vm0, %v315_v13 }
  0x41   : > { %1332 = vmatprep.mubr.msk.f32.mxu1 %vm346_vm0, %v316_v17  ;;  %1362 = vmatmul.mubr.msk.f32.gmra.mrb[16].mxu0 %vm346_vm0, %v315_v13 }
  0x42   : > { %1364 = vmatprep.mubr.msk.f32.mxu0 %vm346_vm0, %v316_v17 }
  0x44   : > { %1333 = vmatmul.mubr.msk.f32.gmra.mrb[18].mxu1 %vm346_vm0, %v317_v18 }
  0x45   : > { %1335 = vmatprep.mubr.msk.f32.mxu1 %vm346_vm0, %v318_v23  ;;  %1365 = vmatmul.mubr.msk.f32.gmra.mrb[18].mxu0 %vm346_vm0, %v317_v18 }
  0x46   : > { %1367 = vmatprep.mubr.msk.f32.mxu0 %vm346_vm0, %v318_v23 }
  0x48   : > { %1336 = vmatmul.mubr.msk.f32.gmra.mrb[20].mxu1 %vm346_vm0, %v319_v25 }
  0x49   : > { %1338 = vmatprep.mubr.msk.f32.mxu1 %vm346_vm0, %v320_v32  ;;  %1368 = vmatmul.mubr.msk.f32.gmra.mrb[20].mxu0 %vm346_vm0, %v319_v25 }
  0x4a   : > { %1370 = vmatprep.mubr.msk.f32.mxu0 %vm346_vm0, %v320_v32 }
  0x4c   : > { %1339 = vmatmul.mubr.msk.f32.gmra.mrb[22].mxu1 %vm346_vm0, %v321_v33 }
  0x4d   : > { %1371 = vmatmul.mubr.msk.f32.gmra.mrb[22].mxu0 %vm346_vm0, %v321_v33 }
  0xf3   : > { %v1303_v38 = vpop.f32.mrb[0].mxu1 }
  0xf4   : > { %v1295_v39 = vpop.f32.mrb[0].mxu0  ;;  %v437_v40 = vpop.f32.mrb[1].mxu1 }
  0xf5   : > { %v405_v41 = vpop.f32.mrb[1].mxu0  ;;  %v1304_v42 = vpop.f32.mrb[2].mxu1 }
  0xf6   : > { %v1220_v43 = vpack.c.bf16 %v1304_v42, %v1303_v38  ;;  %v1296_v44 = vpop.f32.mrb[2].mxu0  ;;  %v440_v45 = vpop.f32.mrb[3].mxu1 }
  0xf7   : > { %v1200_v46 = vpack.c.bf16 %v1296_v44, %v1295_v39  ;;  %v1215_v47 = vpack.c.bf16 %v440_v45, %v437_v40  ;;  %v408_v48 = vpop.f32.mrb[3].mxu0 }
  0xf8   : > { %1236 = vst [vmem:[%s276_s14 + $0x28] sm:$0xff] %v1220_v43   ;;  %v1195_v49 = vpack.c.bf16 %v408_v48, %v405_v41 }
  0xf9   : > { %1232 = vst [vmem:[%s276_s14 + $0x8] sm:$0xff] %v1200_v46   ;;  %1235 = vst [vmem:[%s276_s14 + $0x20] sm:$0xff] %v1215_v47  }
  0xfa   : > { %1196 = vst [vmem:[%s276_s14] sm:$0xff] %v1195_v49  }
  0xfb   : > { %v1307_v50 = vpop.f32.mrb[4].mxu1 }
  0xfc   : > { %v1299_v51 = vpop.f32.mrb[4].mxu0  ;;  %v453_v52 = vpop.f32.mrb[5].mxu1 }
  0xfd   : > { %v421_v53 = vpop.f32.mrb[5].mxu0  ;;  %v1308_v54 = vpop.f32.mrb[6].mxu1 }
  0xfe   : > { %v1230_v55 = vpack.c.bf16 %v1308_v54, %v1307_v50  ;;  %v1300_v56 = vpop.f32.mrb[6].mxu0  ;;  %v456_v57 = vpop.f32.mrb[7].mxu1 }
  0xff   : > { %v1210_v58 = vpack.c.bf16 %v1300_v56, %v1299_v51  ;;  %v1225_v59 = vpack.c.bf16 %v456_v57, %v453_v52  ;;  %v424_v60 = vpop.f32.mrb[7].mxu0 }
 0x100   : > { %1238 = vst [vmem:[%s276_s14 + $0x38] sm:$0xff] %v1230_v55   ;;  %v1205_v61 = vpack.c.bf16 %v424_v60, %v421_v53 }
 0x101   : > { %1234 = vst [vmem:[%s276_s14 + $0x18] sm:$0xff] %v1210_v58   ;;  %1237 = vst [vmem:[%s276_s14 + $0x30] sm:$0xff] %v1225_v59  }
 0x102   : > { %1233 = vst [vmem:[%s276_s14 + $0x10] sm:$0xff] %v1205_v61  }
 0x103   : > { %v1319_v63 = vpop.f32.mrb[8].mxu1 }
 0x104   : > { %1456 = shalt.err (!%p1453_p3)
}
 0x105   : > { %s1457_s15 = scalar_lea.hbm %s1739_s21, 1024  ;;  %s1461_s18 = scalar_lea.hbm %s1902_s5, 2048 }
 0x106   : > { %p1458_p4 = scmp.ne.s32.totalorder %s1739_s21, %s1457_s15  ;;  %p1462_p9 = scmp.lt.u32.totalorder %s1739_s21, %s1902_s5 }
 0x107   : > { %p1463_p10 = scmp.lt.u32.totalorder %s1461_s18, %s1457_s15  ;;  %p1465_p12 = scmp.lt.u32.totalorder %s1457_s15, %s1739_s21 }
 0x108   : > { %p1459_p7 = pnand %p1458_p4, %p1623_p5 }
 0x109   : > { %p1464_p11 = por %p1463_p10, %p1462_p9 }
 0x10a   : > { %p1460_p8 = pneg %p1459_p7 }
 0x10b   : > { %p1466_p13 = por %p1465_p12, %p1464_p11 }
 0x10d   : > { %p1467_p0 = pnand %p1466_p13, %p1460_p8 }
 0x10f   : > { %1470 = shalt.err (!%p1467_p0)
}
 0x110   : > { %s1540_s29 = smov 64   ;;  %s1541_s13 = smov 4   ;;  %v679_v0 = vadd.f32 %v1319_v63, %v1746_v62  ;;  %v673_v1 = vpop.f32.mrb[9].mxu1  ;;  %v1351_v2 = vpop.f32.mrb[8].mxu0 }
 0x111   : > { %1393 = dma.vmem_to_hbm [thread:$0]  (%p1623_p5), %s1741_s17, 1024, %s1739_s21, %s935_s19, %s1540_s29, %s1540_s29, %s1541_s13   ;;  %v674_v3 = vadd.f32 %v1746_v62, %v673_v1  ;;  %v838_v4 = vpop.f32.mrb[9].mxu0  ;;  %v1322_v5 = vpop.f32.mrb[10].mxu1 }
 0x112   : > { %919 = vst.msk [vmem:[%s1753_s16 + $0x8] sm:$0xff] %vm917_vm1, %v1351_v2  ;;  %s1909_s20 = sshll.u32 %s1731_s8, 7  ;;  %918 = vst.msk [vmem:[%s1753_s16] sm:$0xff] %vm917_vm1, %v838_v4  ;;  %v689_v6 = vadd.f32 %v1322_v5, %v1746_v62  ;;  %v683_v7 = vpop.f32.mrb[11].mxu1  ;;  %v1354_v8 = vpop.f32.mrb[10].mxu0  ;;  %s1191_s17 = sshll.u32 %s1606_s28, 11 }
 0x113   : > { %s1785_s22 = scalar_lea.vmem [#allocation4], %s1909_s20  ;;  %v684_v9 = vadd.f32 %v1746_v62, %v683_v7  ;;  %921 = vst.msk [vmem:[%s1753_s16 + $0x18] sm:$0xff] %vm917_vm1, %v1354_v8  ;;  %v848_v10 = vpop.f32.mrb[11].mxu0  ;;  %v1325_v11 = vpop.f32.mrb[12].mxu1  ;;  %s1845_s9 = scalar_lea.hbm %s1903_s6, %s1191_s17 }
 0x114   : > { %753 = vst [vmem:[%s1785_s22 + $0x8] sm:$0xff] %v679_v0  ;;  %752 = vst [vmem:[%s1785_s22] sm:$0xff] %v674_v3  ;;  %v699_v12 = vadd.f32 %v1325_v11, %v1746_v62  ;;  %v693_v13 = vpop.f32.mrb[13].mxu1  ;;  %v1357_v14 = vpop.f32.mrb[12].mxu0  ;;  %s974_s21 = sshll.u32 %s1785_s22, 4  ;;  %s940_s28 = scalar_lea.sflag [#allocation5], %s1731_s8  ;;  %s1847_s21 = int_to_ptr.vmem [resolvable:$true] %s974_s21 }
 0x115   : > { %755 = vst [vmem:[%s1785_s22 + $0x18] sm:$0xff] %v689_v6  ;;  %920 = vst.msk [vmem:[%s1753_s16 + $0x10] sm:$0xff] %vm917_vm1, %v848_v10  ;;  %v694_v15 = vadd.f32 %v1746_v62, %v693_v13  ;;  %v858_v16 = vpop.f32.mrb[13].mxu0  ;;  %v1328_v17 = vpop.f32.mrb[14].mxu1  ;;  %s1471_s14 = scalar_lea.vmem %s1847_s21, 2048  ;;  %s1542_s18 = smov [#allocation4]  }
 0x116   : > { %754 = vst [vmem:[%s1785_s22 + $0x10] sm:$0xff] %v684_v9  ;;  %923 = vst.msk [vmem:[%s1753_s16 + $0x28] sm:$0xff] %vm917_vm1, %v1357_v14  ;;  %v709_v18 = vadd.f32 %v1328_v17, %v1746_v62  ;;  %v703_v19 = vpop.f32.mrb[15].mxu1  ;;  %v1360_v20 = vpop.f32.mrb[14].mxu0  ;;  %p1472_p1 = scmp.ne.s32.totalorder %s1847_s21, %s1471_s14  ;;  %s1475_s23 = sshll.u32 %s1542_s18, 4  ;;  %s1476_s23 = int_to_ptr.vmem [resolvable:$false] %s1475_s23 }
 0x117   : > { %757 = vst [vmem:[%s1785_s22 + $0x28] sm:$0xff] %v699_v12  ;;  %922 = vst.msk [vmem:[%s1753_s16 + $0x20] sm:$0xff] %vm917_vm1, %v858_v16  ;;  %v704_v21 = vadd.f32 %v1746_v62, %v703_v19  ;;  %v868_v22 = vpop.f32.mrb[15].mxu0  ;;  %v1331_v23 = vpop.f32.mrb[16].mxu1  ;;  %s1477_s0 = scalar_lea.vmem %s1476_s23, 4096  ;;  %p1478_p4 = scmp.lt.s32.totalorder %s1847_s21, %s1476_s23 }
 0x118   : > { %756 = vst [vmem:[%s1785_s22 + $0x20] sm:$0xff] %v694_v15  ;;  %925 = vst.msk [vmem:[%s1753_s16 + $0x38] sm:$0xff] %vm917_vm1, %v1360_v20  ;;  %v719_v24 = vadd.f32 %v1331_v23, %v1746_v62  ;;  %v713_v25 = vpop.f32.mrb[17].mxu1  ;;  %v1363_v26 = vpop.f32.mrb[16].mxu0  ;;  %p1473_p2 = pnand %p1472_p1, %p1623_p5  ;;  %p1479_p7 = scmp.lt.s32.totalorder %s1477_s0, %s1471_s14 }
 0x119   : > { %759 = vst [vmem:[%s1785_s22 + $0x38] sm:$0xff] %v709_v18  ;;  %924 = vst.msk [vmem:[%s1753_s16 + $0x30] sm:$0xff] %vm917_vm1, %v868_v22  ;;  %v714_v27 = vadd.f32 %v1746_v62, %v713_v25  ;;  %v878_v28 = vpop.f32.mrb[17].mxu0  ;;  %v1334_v29 = vpop.f32.mrb[18].mxu1 }
 0x11a   : > { %758 = vst [vmem:[%s1785_s22 + $0x30] sm:$0xff] %v704_v21  ;;  %927 = vst.msk [vmem:[%s1753_s16 + $0x48] sm:$0xff] %vm917_vm1, %v1363_v26  ;;  %v729_v30 = vadd.f32 %v1334_v29, %v1746_v62  ;;  %v723_v31 = vpop.f32.mrb[19].mxu1  ;;  %v1366_v32 = vpop.f32.mrb[18].mxu0  ;;  %p1474_p3 = pneg %p1473_p2  ;;  %p1480_p8 = por %p1479_p7, %p1478_p4 }
 0x11b   : > { %761 = vst [vmem:[%s1785_s22 + $0x48] sm:$0xff] %v719_v24  ;;  %926 = vst.msk [vmem:[%s1753_s16 + $0x40] sm:$0xff] %vm917_vm1, %v878_v28  ;;  %v724_v33 = vadd.f32 %v1746_v62, %v723_v31  ;;  %v888_v34 = vpop.f32.mrb[19].mxu0  ;;  %v1337_v35 = vpop.f32.mrb[20].mxu1 }
 0x11c   : > { %760 = vst [vmem:[%s1785_s22 + $0x40] sm:$0xff] %v714_v27  ;;  %929 = vst.msk [vmem:[%s1753_s16 + $0x58] sm:$0xff] %vm917_vm1, %v1366_v32  ;;  %v739_v36 = vadd.f32 %v1337_v35, %v1746_v62  ;;  %v733_v37 = vpop.f32.mrb[21].mxu1  ;;  %v1369_v38 = vpop.f32.mrb[20].mxu0  ;;  %p1481_p9 = pnand %p1480_p8, %p1474_p3 }
 0x11d   : > { %763 = vst [vmem:[%s1785_s22 + $0x58] sm:$0xff] %v729_v30  ;;  %928 = vst.msk [vmem:[%s1753_s16 + $0x50] sm:$0xff] %vm917_vm1, %v888_v34  ;;  %v734_v39 = vadd.f32 %v1746_v62, %v733_v37  ;;  %v898_v40 = vpop.f32.mrb[21].mxu0 }
 0x11e   : > { %762 = vst [vmem:[%s1785_s22 + $0x50] sm:$0xff] %v724_v33  ;;  %931 = vst.msk [vmem:[%s1753_s16 + $0x68] sm:$0xff] %vm917_vm1, %v1369_v38 }
 0x11f   : > { %765 = vst [vmem:[%s1785_s22 + $0x68] sm:$0xff] %v739_v36  ;;  %930 = vst.msk [vmem:[%s1753_s16 + $0x60] sm:$0xff] %vm917_vm1, %v898_v40  ;;  %v1340_v41 = vpop.f32.mrb[22].mxu1 }
 0x120   : > { %764 = vst [vmem:[%s1785_s22 + $0x60] sm:$0xff] %v734_v39  ;;  %v749_v42 = vadd.f32 %v1340_v41, %v1746_v62  ;;  %v743_v43 = vpop.f32.mrb[23].mxu1  ;;  %v1372_v44 = vpop.f32.mrb[22].mxu0 }
 0x121   : > { %v744_v45 = vadd.f32 %v1746_v62, %v743_v43  ;;  %933 = vst.msk [vmem:[%s1753_s16 + $0x78] sm:$0xff] %vm917_vm1, %v1372_v44  ;;  %v908_v46 = vpop.f32.mrb[23].mxu0 }
 0x122   : > { %767 = vst [vmem:[%s1785_s22 + $0x78] sm:$0xff] %v749_v42  ;;  %932 = vst.msk [vmem:[%s1753_s16 + $0x70] sm:$0xff] %vm917_vm1, %v908_v46 }
 0x123   : > { %766 = vst [vmem:[%s1785_s22 + $0x70] sm:$0xff] %v744_v45 }
 0x124   : > { %1484 = shalt.err (!%p1481_p9)
}
 0x125   : > { %s1485_s16 = scalar_lea.hbm %s1845_s9, 2048  ;;  %s1489_s20 = scalar_lea.hbm %s1903_s6, 4096 }
 0x126   : > { %p1486_p10 = scmp.ne.s32.totalorder %s1845_s9, %s1485_s16  ;;  %p1490_p13 = scmp.lt.u32.totalorder %s1845_s9, %s1903_s6 }
 0x127   : > { %p1491_p0 = scmp.lt.u32.totalorder %s1489_s20, %s1485_s16  ;;  %p1493_p2 = scmp.lt.u32.totalorder %s1485_s16, %s1845_s9 }
 0x128   : > { %p1487_p11 = pnand %p1486_p10, %p1623_p5 }
 0x129   : > { %p1492_p1 = por %p1491_p0, %p1490_p13 }
 0x12a   : > { %p1488_p12 = pneg %p1487_p11 }
 0x12b   : > { %p1494_p3 = por %p1493_p2, %p1492_p1 }
 0x12d   : > { %p1495_p4 = pnand %p1494_p3, %p1488_p12 }
 0x12f   : > { %1498 = shalt.err (!%p1495_p4)
}
 0x130   : > { %s1543_s19 = smov 128   ;;  %s1544_s15 = smov 8  }
 0x131   : > { %1394 = dma.vmem_to_hbm [thread:$0]  (%p1623_p5), %s1847_s21, 2048, %s1845_s9, %s940_s28, %s1543_s19, %s1543_s19, %s1544_s15  }
 0x132 PF: > { %p1404_p7 = scmp.ge.s32.totalorder %s1537_s27, 2  ;;  %s993_s14 = sand.u32 1, %s1525_s24  }
 0x133   : > { %s994_s18 = scalar_lea.sflag [#allocation3], %s993_s14 }
 0x134   : > { %p1398_p8 = pnand %p1404_p7, %p1627_p6 }
 0x136   : > { %1516 = dma.done.wait (!%p1398_p8), %s994_s18, 1024  }
 0x137   : > { %1518 = vsyncadd (!%p1398_p8), %s994_s18, 4294966272  ;;  %s1003_s23 = scalar_lea.sflag [#allocation5], %s993_s14 }
 0x138   : > { %1520 = dma.done.wait (!%p1398_p8), %s1003_s23, 2048  }
 0x139   : > { %1522 = vsyncadd (!%p1398_p8), %s1003_s23, 4294965248  ;;  %p21_p5 = scmp.ge.s32.totalorder %s1610_s30, 4   ;;  %s1910_s24 = smov %s1529_s25 }
 0x13a   : > { %s1911_s25 = smov %s1533_s26  ;;  %s1912_s26 = smov %s1621_s10 }
 0x13b   : > { %s1913_s27 = smov %s1610_s30  ;;  %23 = sbr.rel (!%p21_p5) target bundleno = 7 (0x7), region = 104 }
 0x142   :  { %1016 = vsyncpa [#allocation3], 1 }
 0x143   :  { %1018 = vsyncpa [#allocation3 + $0x1], 1 }
 0x144   :  { %1019 = vsyncpa [#allocation5], 1 }
 0x145   :  { %1021 = vsyncpa [#allocation5 + $0x1], 1 }

</bundles_post_ra>
